<compile_context>
chip_gen: v6e
topology: v6e:2x2x1
jax: 0.10.0
libtpu: 0.0.40
codegen_flags: <defaults>
</compile_context>

<pallas_src>
import math

import jax
import jax.numpy as jnp
from jax import lax
from jax.experimental import pallas as pl
from jax.experimental.pallas import tpu as pltpu


def _outconv_kernel(x_ref, w_ref, b_ref, out_ref):
    # x_ref block : (1, C_in, TN)   current batch element, current N-tile (compute_dtype)
    # w_ref       : (C_out, C_in)   1x1 conv weight (compute_dtype)
    # b_ref       : (C_out, 1)      conv bias (f32)
    # out_ref     : (1, C_out, TN)
    x = x_ref[0]                      # (C_in, TN)
    w = w_ref[...]                    # (C_out, C_in)

    # 1x1 conv == channel matmul on the MXU; spatial pixels on the lane axis.
    # f32 accumulation regardless of (bf16) input dtype.
    y = lax.dot_general(w, x, (((1,), (0,)), ((), ())),
                        preferred_element_type=jnp.float32)
    out_ref[0] = (y + b_ref[...]).astype(out_ref.dtype)


def outconv_forward(x_nchw, weight, bias, *, tile_n=8192,
                    compute_dtype=jnp.bfloat16, out_dtype=None):
    """x_nchw: (B, C_in, H, W).  weight: (C_out, C_in, 1, 1).  bias: (C_out,)."""
    B, C_in, H, W = x_nchw.shape
    C_out = weight.shape[0]
    N = H * W
    out_dtype = x_nchw.dtype if out_dtype is None else out_dtype

    isz_in = jnp.dtype(compute_dtype).itemsize
    isz_out = jnp.dtype(out_dtype).itemsize

    # --- generation-aware VMEM ceiling (leave headroom for compiler scratch) ---
    try:
        vmem_cap = int(pltpu.get_tpu_info().vmem_capacity_bytes)
    except Exception:
        vmem_cap = 64 << 20
    vmem_ceiling = (vmem_cap * 3) // 4      # ~48 MiB on v7x, ~96 MiB on v5e/v6e

    # --- lane-dense N tile: target >= ~2 MiB of HBM traffic per grid step ---
    target_bytes = 2 << 20
    per_col_bytes = C_in * isz_in + C_out * isz_out
    tn = min(tile_n, max(2048, target_bytes // max(per_col_bytes, 1)))
    tn = min(tn, pl.cdiv(N, 128) * 128)      # never wider than the (rounded-up) row
    if B == 1 and N >= 256:
        # Keep >= 2 parallel grid steps so both v7x TensorCores get work.
        tn = min(tn, (pl.cdiv(N, 2) // 128) * 128)
    TN = max(128, (tn // 128) * 128)

    def _tile_vmem(tn_):
        # double-buffered in/out tiles + (padded) resident weight/bias.
        params = C_out * max(C_in, 128) * isz_in + C_out * 128 * 4
        return 2 * tn_ * C_in * isz_in + 2 * tn_ * C_out * isz_out + 2 * params

    while TN > 128 and _tile_vmem(TN) + (2 << 20) > vmem_ceiling:
        TN = max(128, (TN // 2 // 128) * 128)
    n_tiles = pl.cdiv(N, TN)
    vmem_limit = int(min(max(_tile_vmem(TN) + (2 << 20), 4 << 20), vmem_ceiling))

    # Flatten to (B, C, N) so the large spatial axis sits on the 128-lane axis,
    # and cast to the narrow compute dtype in one pass (reshape is free).
    # No jnp.pad and no output slice: Pallas masks the ragged last N-tile.
    x_flat = x_nchw.reshape(B, C_in, N).astype(compute_dtype)
    w2d = weight.reshape(C_out, C_in).astype(compute_dtype)
    b2d = bias.reshape(C_out, 1).astype(jnp.float32)

    out_flat = pl.pallas_call(
        _outconv_kernel,
        out_shape=jax.ShapeDtypeStruct((B, C_out, N), out_dtype),
        grid_spec=pltpu.PrefetchScalarGridSpec(
            num_scalar_prefetch=0,
            grid=(B, n_tiles),
            in_specs=[
                pl.BlockSpec((1, C_in, TN), lambda b, n: (b, 0, n)),   # x tile
                pl.BlockSpec((C_out, C_in), lambda b, n: (0, 0)),      # weight (resident)
                pl.BlockSpec((C_out, 1), lambda b, n: (0, 0)),         # bias (resident)
            ],
            out_specs=pl.BlockSpec((1, C_out, TN), lambda b, n: (b, 0, n)),
        ),
        compiler_params=pltpu.CompilerParams(
            dimension_semantics=("parallel", "parallel"),
            vmem_limit_bytes=vmem_limit),
    )(x_flat, w2d, b2d)

    return out_flat.reshape(B, C_out, H, W)


def init_outconv_params(key, in_channels, out_channels):
    """Mirror torch Conv2d(kernel_size=1) default init (kaiming_uniform + bias)."""
    kw, kb = jax.random.split(key)
    fan_in = in_channels * 1 * 1
    bound = 1.0 / math.sqrt(fan_in)
    weight = jax.random.uniform(kw, (out_channels, in_channels, 1, 1),
                                jnp.float32, -bound, bound)
    bias = jax.random.uniform(kb, (out_channels,), jnp.float32, -bound, bound)
    return weight, bias


def _outconv_reference(x_nchw, weight, bias):
    """Pure-JAX f32 reference of the torch 1x1 conv forward."""
    w2d = weight[:, :, 0, 0]
    return jnp.einsum("oi,bihw->bohw", w2d, x_nchw) + bias[None, :, None, None]


if __name__ == "__main__":
    B, C_IN, C_OUT, H, W = 2, 4, 3, 16, 16

    key = jax.random.PRNGKey(0)
    k_x, k_p = jax.random.split(key)
    x = jax.random.normal(k_x, (B, C_IN, H, W), jnp.float32)
    weight, bias = init_outconv_params(k_p, C_IN, C_OUT)

    out = outconv_forward(x, weight, bias)
    out = jax.block_until_ready(out)

    ref = _outconv_reference(x, weight, bias)
    assert out.shape == (B, C_OUT, H, W)
    # bf16 input/weight stream with f32 accumulation -> loosened tolerance.
    assert jnp.allclose(out, ref, atol=5e-2, rtol=5e-2)

    print("KERNEL_OK")
</pallas_src>

<mosaic_0001>
module attributes {stable_mosaic.version = 11 : i64} {
  func.func @_outconv_kernel(%arg0: i32, %arg1: i32, %arg2: memref<1x4x256xbf16, #tpu.memory_space<vmem>>, %arg3: memref<3x4xbf16, #tpu.memory_space<vmem>>, %arg4: memref<3x1xf32, #tpu.memory_space<vmem>>, %arg5: memref<1x3x256xf32, #tpu.memory_space<vmem>>) attributes {dimension_semantics = [#tpu.dimension_semantics<parallel>, #tpu.dimension_semantics<parallel>], iteration_bounds = array<i64: 2, 1>, scalar_prefetch = 0 : i64, scratch_operands = 0 : i64, tpu.core_type = #tpu.core_type<tc>, window_params = [{transform_indices = @transform_0, window_bounds = array<i64: 1, 4, 256>}, {pipeline_mode = #tpu.pipeline_mode<synchronous>, transform_indices = @transform_1, window_bounds = array<i64: 3, 4>}, {pipeline_mode = #tpu.pipeline_mode<synchronous>, transform_indices = @transform_2, window_bounds = array<i64: 3, 1>}, {transform_indices = @transform_3, window_bounds = array<i64: 1, 3, 256>}]} {
    %c0 = arith.constant 0 : index
    %c0_0 = arith.constant 0 : index
    %c0_1 = arith.constant 0 : index
    %0 = vector.load %arg2[%c0, %c0_0, %c0_1] : memref<1x4x256xbf16, #tpu.memory_space<vmem>>, vector<1x4x256xbf16>
    %1 = vector.shape_cast %0 : vector<1x4x256xbf16> to vector<4x256xbf16>
    %c0_2 = arith.constant 0 : index
    %c0_3 = arith.constant 0 : index
    %2 = vector.load %arg3[%c0_2, %c0_3] : memref<3x4xbf16, #tpu.memory_space<vmem>>, vector<3x4xbf16>
    %cst = arith.constant dense<0.000000e+00> : vector<3x256xf32>
    %3 = tpu.matmul %2, %1, %cst {dimension_numbers = #tpu.dot_dimension_numbers<[1], [0], [0], [1], [0, 0, 1, 1], [], []>} : vector<3x4xbf16>, vector<4x256xbf16>, vector<3x256xf32> -> vector<3x256xf32>
    %c0_4 = arith.constant 0 : index
    %c0_5 = arith.constant 0 : index
    %4 = vector.load %arg4[%c0_4, %c0_5] : memref<3x1xf32, #tpu.memory_space<vmem>>, vector<3x1xf32>
    %5 = vector.broadcast %4 : vector<3x1xf32> to vector<3x256xf32>
    %6 = arith.addf %3, %5 : vector<3x256xf32>
    %c0_6 = arith.constant 0 : index
    %c0_7 = arith.constant 0 : index
    %c0_8 = arith.constant 0 : index
    %7 = vector.load %arg5[%c0_6, %c0_7, %c0_8] : memref<1x3x256xf32, #tpu.memory_space<vmem>>, vector<1x3x256xf32>
    %8 = vector.shape_cast %7 : vector<1x3x256xf32> to vector<3x256xf32>
    %9 = vector.shape_cast %6 : vector<3x256xf32> to vector<1x3x256xf32>
    tpu.vector_store %arg5[%c0_6, %c0_7, %c0_8], %9 {strides = array<i32>} : memref<1x3x256xf32, #tpu.memory_space<vmem>>, vector<1x3x256xf32>,
    return
  }
  func.func @transform_0(%arg0: i32, %arg1: i32) -> (i32, i32, i32) {
    %c0_i32 = arith.constant 0 : i32
    %c0_i32_0 = arith.constant 0 : i32
    return %arg0, %c0_i32, %arg1 : i32, i32, i32
  }
  func.func @transform_1(%arg0: i32, %arg1: i32) -> (i32, i32) {
    %c0_i32 = arith.constant 0 : i32
    %c0_i32_0 = arith.constant 0 : i32
    %c0_i32_1 = arith.constant 0 : i32
    return %c0_i32, %c0_i32_0 : i32, i32
  }
  func.func @transform_2(%arg0: i32, %arg1: i32) -> (i32, i32) {
    %c0_i32 = arith.constant 0 : i32
    %c0_i32_0 = arith.constant 0 : i32
    %c0_i32_1 = arith.constant 0 : i32
    return %c0_i32, %c0_i32_0 : i32, i32
  }
  func.func @transform_3(%arg0: i32, %arg1: i32) -> (i32, i32, i32) {
    %c0_i32 = arith.constant 0 : i32
    %c0_i32_0 = arith.constant 0 : i32
    return %arg0, %c0_i32, %arg1 : i32, i32, i32
  }
}

</mosaic_0001>

<bundles_post_ra>
// kernel: tpu_custom_call.1
= control target key start
LH: loop header
LB: loop body
LE: loop exit
PB: predicated region body
PF: predicated region fallthrough
CT: control target
= control target key end

     0   :  { %8 = vsyncpa [#allocation3], 0  ;;  %s670_s0 = inlined_call_operand.hbm [shape: bf16[2,4,256], index: 0, kind: input, shape index: {}]   ;;  %s671_s1 = inlined_call_operand.vmem [shape: bf16[3,4], index: 1, kind: input, shape index: {}]   ;;  %s672_s2 = inlined_call_operand.vmem [shape: f32[3,1], index: 2, kind: input, shape index: {}]   ;;  %s673_s3 = inlined_call_operand.vmem [shape: f32[2,3,256], index: 3, kind: output, shape index: {}]  }
   0x1   :  { %10 = vsyncpa [#allocation3 + $0x1], 0  ;;  %s564_s12 = smov 0   ;;  %s566_s13 = smov 0  }
   0x2   :  { %s568_s14 = smov 0   ;;  %s570_s15 = smov 0  }
   0x3   :  { %s572_s16 = smov 0   ;;  %s574_s17 = smov 0  }
   0x4 LB: > { %s387_s18 = sadd.s32 4294967295, %s540_s17   ;;  %s28_s19 = sadd.s32 1, %s536_s16  ;;  %s540_s17 = sphi %s574_s17, %s16_s17   ;;  %s536_s16 = sphi %s572_s16, %s681_s16   ;;  %s532_s15 = sphi %s570_s15, %s680_s15   ;;  %s528_s14 = sphi %s568_s14, %s679_s14   ;;  %s524_s13 = sphi %s566_s13, %s678_s13   ;;  %s520_s12 = sphi %s564_s12, %s677_s12  }
   0x5   : > { %p30_p0 = scmp.ge.s32.totalorder %s28_s19, 2  ;;  %s37_s20 = sadd.s32 1, %s528_s14 }
   0x6   : > { %p44_p1 = scmp.ne.s32.totalorder %s528_s14, %s524_s13  ;;  %p45_p2 = scmp.eq.s32.totalorder %s540_s17, 0 }
   0x7   : > { %s683_s19 = smov (%p30_p0, %s28_s19), 0  ;;  %p50_p4 = scmp.ne.s32.totalorder %s524_s13, %s520_s12 }
   0x8   : > { %p600_p3 = por %p45_p2, %p44_p1  ;;  %s32_s22 = ssub.s32 %s536_s16, %s683_s19 }
   0x9   : > { %p51_p5 = scmp.eq.s32.totalorder %s387_s18, 0  ;;  %p35_p6 = scmp.eq.s32.totalorder %s32_s22, 0 }
   0xa   : > { %p411_p8 = scmp.lt.s32.totalorder %s540_s17, 2  ;;  %s150_s25 = sand.u32 1, %s528_s14  }
   0xb   : > { %p607_p7 = por %p51_p5, %p50_p4  ;;  %s403_s26 = sshll.u32 %s536_s16, 6 }
   0xc   : > { %s613_s24 = scalar_select %p35_p6, %s528_s14, %s37_s20  }
   0xd   : > { %s391_s27 = sshll.u32 %s150_s25, 2  ;;  %s162_s30 = scalar_lea.hbm %s670_s0, %s403_s26 }
   0xe   : > { %s154_s4 = scalar_lea.vmem [#allocation2], %s391_s27  ;;  %p622_p9 = pnand %p411_p8, %p600_p3 }
   0xf   : > { %s164_s5 = sshll.u32 %s154_s4, 4  ;;  %p394_p10 = scmp.ge.s32.totalorder %s540_s17, 1  ;;  %s165_s5 = int_to_ptr.vmem [resolvable:$true] %s164_s5 }
  0x10   : > { %p169_p11 = scmp.lt.s32.totalorder %s540_s17, 3  ;;  %s151_s7 = scalar_lea.sflag [#allocation3], %s150_s25 }
  0x11   : > { %p464_p12 = pneg %p622_p9  ;;  %s475_s8 = scalar_lea.vmem %s165_s5, 64 }
  0x12   : > { %p476_p13 = scmp.ne.s32.totalorder %s165_s5, %s475_s8  ;;  %s542_s9 = smov [#allocation2]  }
  0x13   : > { %s480_s10 = sshll.u32 %s542_s9, 4  ;;  %s481_s10 = int_to_ptr.vmem [resolvable:$false] %s480_s10 }
  0x14   : > { %p478_p0 = pnand %p476_p13, %p464_p12  ;;  %s482_s11 = scalar_lea.vmem %s481_s10, 128 }
  0x15   : > { %p483_p2 = scmp.lt.s32.totalorder %s165_s5, %s481_s10  ;;  %p484_p3 = scmp.lt.s32.totalorder %s482_s11, %s475_s8 }
  0x16   : > { %p479_p1 = pneg %p478_p0 }
  0x17   : > { %p485_p4 = por %p484_p3, %p483_p2 }
  0x19   : > { %p486_p5 = pnand %p485_p4, %p479_p1 }
  0x1b   : > { %489 = shalt.err (!%p486_p5)
}
  0x1c   : > { %410 = dma.hbm_to_vmem [thread:$0]  (!%p622_p9), %s162_s30, 64, %s165_s5, %s151_s7  }
  0x1d   : > { %p170_p6 = pnand %p394_p10, %p169_p11 }
  0x1e   : > { %s175_s12 = sand.u32 (!%p170_p6), 1, %s524_s13  }
  0x1f   : > { %173 = sbr.rel (%p170_p6) target bundleno = 245 (0xf5), region = 32  ;;  %s395_s18 = sshll.u32 (!%p170_p6), %s175_s12, 2 }
  0x20   : > { %s176_s20 = scalar_lea.sflag (!%p170_p6), [#allocation3], %s175_s12  ;;  %s179_s21 = scalar_lea.vmem (!%p170_p6), [#allocation2], %s395_s18 }
  0x24   : > { %515 = dma.done.wait (%p607_p7), %s176_s20, 64  }
  0x25   : > { %517 = vsyncadd (%p607_p7), %s176_s20, 4294967232  ;;  %v543_v0 = vmov 0   ;;  %vm239_vm0 = vcmask 1041408   ;;  %v220_v4 = vld [vmem:[%s672_s2] sm:$0x7]  ;;  %vm235_vm1 = vcmask 31744  }
  0x26   : > { %278 = vmatprep.mubr.bf16.mxu0 %v543_v0  ;;  %461 = vset.pattern.permute.xlu0 %v543_v0  ;;  %v398_v1 = vld.sshfl [vmem:[%s179_s21] sm:$0x33 pattern:$0x76325410]  ;;  %p208_p7 = scmp.lt.s32.totalorder %s532_s15, 1 }
  0x27   : > { %v234_v2 = vcombine.high %v398_v1, %v398_v1  ;;  %v241_v3 = vsel %vm239_vm0, %v398_v1, 0  ;;  %223 = vperm.xlu0 %461, %v220_v4   ;;  %v219_v5 = vld [vmem:[%s671_s1] sm:$0x3] }
  0x28   : > { %s685_s15 = smov (!%p208_p7, %s532_s15), 1 }
  0x29   : > { %399 = vmatprep.subr.msk.bf16.mxu0 %vm239_vm0, %v234_v2  ;;  %s404_s23 = sshll.u32 %s685_s15, 3 }
  0x2a   : > { %261 = vmatpush1.bf16.msra.mxu0 %v241_v3  ;;  %s215_s30 = scalar_lea.vmem %s673_s3, %s404_s23 }
  0x2d   : > { %400 = vmatmul.mubr.msk.bf16.vlgmr.msra.gmra.mxu0 %vm235_vm1, %v219_v5 }
  0xa2   : > { %v224_v6 = vpop.permute.xlu0 %223 }
  0xed   : > { %v280_v7 = vpop.f32.mrf.mxu0 }
  0xee   : > { %v281_v9 = vadd.f32 %v280_v7, %v224_v6 }
  0xef   : > { %v282_v8 = vpop.f32.mrf.mxu0 }
  0xf0   : > { %v283_v10 = vadd.f32 %v282_v8, %v224_v6 }
  0xf1   : > { %v284_v11 = vpop.f32.mrf.mxu0 }
  0xf2   : > { %v289_v12 = vcombine.low %v281_v9, %v283_v10 }
  0xf3   : > { %v285_v13 = vpop.f32.mrf.mxu0 }
  0xf4   : > { %291 = vst [vmem:[%s215_s30] sm:$0x77] %v289_v12 }
  0xf5 PF: > { %s16_s17 = sadd.s32 1, %s540_s17   ;;  %s677_s12 = smov %s524_s13 }
  0xf6   : > { %p13_p8 = scmp.ge.s32.totalorder %s16_s17, 4   ;;  %s678_s13 = smov %s528_s14 }
  0xf7   : > { %s679_s14 = smov %s613_s24  ;;  %s680_s15 = smov %s536_s16 }
  0xf8   : > { %s681_s16 = smov %s683_s19  ;;  %15 = sbr.rel (!%p13_p8) target bundleno = 4 (0x4), region = 72 }
  0xfd   :  { %322 = vsyncpa [#allocation3], 1 }
  0xfe   :  { %324 = vsyncpa [#allocation3 + $0x1], 1 }

</bundles_post_ra>
